<compile_context>
chip_gen: v6e
topology: v6e:2x2x1
jax: 0.10.0
libtpu: 0.0.40
codegen_flags: <defaults>
</compile_context>

<pallas_src>
import functools

import jax
import jax.numpy as jnp
from jax.experimental import pallas as pl
from jax.experimental.pallas import tpu as pltpu


def _round_up(x, m):
    return ((x + m - 1) // m) * m


def _patch_embed_kernel(patches_ref, w_ref, posb_ref, out_ref):
    # patches_ref: (1, TM, PD) bf16     w_ref: (PD, TN) bf16
    # posb_ref:    (TM, TN) f32  (pos_embed patch rows + conv bias, pre-folded)
    # out_ref:     (1, TM, TN) f32
    z = jnp.dot(patches_ref[0], w_ref[...], preferred_element_type=jnp.float32)
    out_ref[0, :, :] = z + posb_ref[...]


@functools.partial(jax.jit, static_argnames=("patch_size",))
def embedding_layer(x, conv_w, conv_b, cls_token, pos_embed, patch_size):
    """x: (B, C, H, W) float32 (NCHW, as in PyTorch).
    conv_w: (E, C, P, P), conv_b: (E,), cls_token: (1,1,E), pos_embed: (1,N+1,E).
    Returns (B, N+1, E) float32."""
    B, C, H, W = x.shape
    E = conv_w.shape[0]
    P = patch_size
    Hp, Wp = H // P, W // P
    N = Hp * Wp
    PD = C * P * P

    # --- patch extraction (wrapper-side glue) ------------------------------
    # TODO(synk): for very large images this reshape/transpose is one extra HBM
    # pass; it could be fused into the kernel with a (1, C, P, W) BlockSpec
    # over a (B, Hp) grid, doing the small per-row rearrangement in VMEM.
    patches = x.reshape(B, C, Hp, P, Wp, P).transpose(0, 2, 4, 1, 3, 5)
    patches = patches.reshape(B, N, PD)

    # --- tiling choices ----------------------------------------------------
    E_pad = _round_up(E, 128)                      # lane-dense output
    TN = 256 if E_pad >= 256 else E_pad            # MXU-native N tile
    TM = 256 if N >= 256 else _round_up(N, 16)     # token tile (bf16 sublane = 16)
    N_pad = _round_up(N, TM)

    # --- operands -----------------------------------------------------------
    # bf16 matmul operands; f32 accumulate inside the kernel.
    patches_b = patches.astype(jnp.bfloat16)
    if N_pad != N:
        patches_b = jnp.pad(patches_b, ((0, 0), (0, N_pad - N), (0, 0)))

    w2d = conv_w.reshape(E, PD).T.astype(jnp.bfloat16)       # (PD, E)
    if E_pad != E:
        w2d = jnp.pad(w2d, ((0, 0), (0, E_pad - E)))         # zero K->pad cols

    # Fold conv bias into the patch-token rows of pos_embed (both grid-invariant).
    posb = pos_embed[0, 1:, :].astype(jnp.float32) + conv_b[None, :].astype(jnp.float32)
    posb = jnp.pad(posb, ((0, N_pad - N), (0, E_pad - E)))

    grid = (B, N_pad // TM, E_pad // TN)

    # NOTE: for very large ViT configs on v7x (64 MiB VMEM), single-buffer the
    # grid-invariant weight/posb (pipeline_mode=pl.Buffered(1)) or tile PD.
    patch_tokens = pl.pallas_call(
        _patch_embed_kernel,
        out_shape=jax.ShapeDtypeStruct((B, N_pad, E_pad), jnp.float32),
        grid_spec=pl.GridSpec(
            grid=grid,
            in_specs=[
                pl.BlockSpec((1, TM, PD), lambda b, i, j: (b, i, 0)),   # patches
                pl.BlockSpec((PD, TN), lambda b, i, j: (0, j)),         # weight
                pl.BlockSpec((TM, TN), lambda b, i, j: (i, j)),         # pos+bias
            ],
            out_specs=pl.BlockSpec((1, TM, TN), lambda b, i, j: (b, i, j)),
        ),
        compiler_params=pltpu.CompilerParams(
            dimension_semantics=("parallel", "parallel", "parallel"),
            vmem_limit_bytes=64 * 1024 * 1024,
        ),
    )(patches_b, w2d, posb)

    patch_tokens = patch_tokens[:, :N, :E]

    # cls token row (+ its pos row) handled outside the kernel so every kernel
    # store stays 8-sublane aligned. This is only B*E elements.
    cls_row = cls_token.reshape(1, 1, E).astype(jnp.float32) + \
        pos_embed[:, 0:1, :].astype(jnp.float32)
    cls_rows = jnp.broadcast_to(cls_row, (B, 1, E))
    return jnp.concatenate([cls_rows, patch_tokens], axis=1)


def _reference(x, conv_w, conv_b, cls_token, pos_embed, patch_size, bf16_operands):
    """Pure-jnp reference of the PyTorch forward. If bf16_operands, the matmul
    operands are rounded to bf16 first (matching kernel numerics exactly)."""
    B, C, H, W = x.shape
    E = conv_w.shape[0]
    P = patch_size
    Hp, Wp = H // P, W // P
    N = Hp * Wp
    patches = x.reshape(B, C, Hp, P, Wp, P).transpose(0, 2, 4, 1, 3, 5)
    patches = patches.reshape(B, N, C * P * P)
    w2d = conv_w.reshape(E, -1).T
    if bf16_operands:
        patches = patches.astype(jnp.bfloat16).astype(jnp.float32)
        w2d = w2d.astype(jnp.bfloat16).astype(jnp.float32)
    z = jnp.dot(patches, w2d, preferred_element_type=jnp.float32)
    z = z + conv_b[None, None, :]
    cls = jnp.broadcast_to(cls_token, (B, 1, E))
    z = jnp.concatenate([cls, z], axis=1)
    return z + pos_embed


if __name__ == "__main__":
    # Small config consistent with the module: B=2, C=4, img=16, patch=4, E=32
    B, C, H, W = 2, 4, 16, 16
    patch_size = 4
    embed_dim = 32
    num_tokens = (H // patch_size) * (W // patch_size) + 1

    key = jax.random.PRNGKey(0)
    k_x, k_w, k_b, k_cls, k_pos = jax.random.split(key, 5)

    x = jax.random.normal(k_x, (B, C, H, W), dtype=jnp.float32)
    conv_w = jax.random.normal(
        k_w, (embed_dim, C, patch_size, patch_size), dtype=jnp.float32) * 0.02
    conv_b = jax.random.normal(k_b, (embed_dim,), dtype=jnp.float32) * 0.01
    cls_token = jax.random.normal(k_cls, (1, 1, embed_dim), dtype=jnp.float32) * 1e-6
    pos_embed = jax.random.truncated_normal(
        k_pos, -2.0, 2.0, (1, num_tokens, embed_dim), dtype=jnp.float32) * 0.02

    out = embedding_layer(x, conv_w, conv_b, cls_token, pos_embed, patch_size)
    out = jax.block_until_ready(out)
    assert out.shape == (B, num_tokens, embed_dim)

    # Tight check vs. a reference using the same bf16-rounded matmul operands
    # (f32 accumulate), i.e. identical numerics to the kernel.
    ref_bf16 = _reference(x, conv_w, conv_b, cls_token, pos_embed, patch_size,
                          bf16_operands=True)
    assert jnp.allclose(out, ref_bf16, atol=1e-5, rtol=1e-5), \
        float(jnp.max(jnp.abs(out - ref_bf16)))

    # Semantics check vs. the full-f32 PyTorch-equivalent reference
    # (tolerance appropriate for bf16 matmul operands).
    ref_f32 = _reference(x, conv_w, conv_b, cls_token, pos_embed, patch_size,
                         bf16_operands=False)
    assert jnp.allclose(out, ref_f32, atol=3e-2, rtol=3e-2), \
        float(jnp.max(jnp.abs(out - ref_f32)))

    print("KERNEL_OK")
</pallas_src>

<mosaic_0001>
module attributes {stable_mosaic.version = 11 : i64} {
  func.func @_patch_embed_kernel(%arg0: i32, %arg1: i32, %arg2: i32, %arg3: memref<1x16x64xbf16, #tpu.memory_space<vmem>>, %arg4: memref<64x128xbf16, #tpu.memory_space<vmem>>, %arg5: memref<16x128xf32, #tpu.memory_space<vmem>>, %arg6: memref<1x16x128xf32, #tpu.memory_space<vmem>>) attributes {dimension_semantics = [#tpu.dimension_semantics<parallel>, #tpu.dimension_semantics<parallel>, #tpu.dimension_semantics<parallel>], iteration_bounds = array<i64: 2, 1, 1>, scalar_prefetch = 0 : i64, scratch_operands = 0 : i64, tpu.core_type = #tpu.core_type<tc>, window_params = [{transform_indices = @transform_0, window_bounds = array<i64: 1, 16, 64>}, {transform_indices = @transform_1, window_bounds = array<i64: 64, 128>}, {transform_indices = @transform_2, window_bounds = array<i64: 16, 128>}, {transform_indices = @transform_3, window_bounds = array<i64: 1, 16, 128>}]} {
    %c0 = arith.constant 0 : index
    %c0_0 = arith.constant 0 : index
    %c0_1 = arith.constant 0 : index
    %0 = vector.load %arg3[%c0, %c0_0, %c0_1] : memref<1x16x64xbf16, #tpu.memory_space<vmem>>, vector<1x16x64xbf16>
    %1 = vector.shape_cast %0 : vector<1x16x64xbf16> to vector<16x64xbf16>
    %c0_2 = arith.constant 0 : index
    %c0_3 = arith.constant 0 : index
    %2 = vector.load %arg4[%c0_2, %c0_3] : memref<64x128xbf16, #tpu.memory_space<vmem>>, vector<64x128xbf16>
    %cst = arith.constant dense<0.000000e+00> : vector<16x128xf32>
    %3 = tpu.matmul %1, %2, %cst {dimension_numbers = #tpu.dot_dimension_numbers<[1], [0], [0], [1], [0, 0, 1, 1], [], []>} : vector<16x64xbf16>, vector<64x128xbf16>, vector<16x128xf32> -> vector<16x128xf32>
    %c0_4 = arith.constant 0 : index
    %c0_5 = arith.constant 0 : index
    %4 = vector.load %arg5[%c0_4, %c0_5] : memref<16x128xf32, #tpu.memory_space<vmem>>, vector<16x128xf32>
    %5 = arith.addf %3, %4 : vector<16x128xf32>
    %c0_6 = arith.constant 0 : index
    %c0_7 = arith.constant 0 : index
    %c0_8 = arith.constant 0 : index
    %6 = vector.load %arg6[%c0_6, %c0_7, %c0_8] : memref<1x16x128xf32, #tpu.memory_space<vmem>>, vector<1x16x128xf32>
    %7 = vector.shape_cast %6 : vector<1x16x128xf32> to vector<16x128xf32>
    %8 = vector.shape_cast %5 : vector<16x128xf32> to vector<1x16x128xf32>
    tpu.vector_store %arg6[%c0_6, %c0_7, %c0_8], %8 {strides = array<i32>} : memref<1x16x128xf32, #tpu.memory_space<vmem>>, vector<1x16x128xf32>,
    return
  }
  func.func @transform_0(%arg0: i32, %arg1: i32, %arg2: i32) -> (i32, i32, i32) {
    %c0_i32 = arith.constant 0 : i32
    %c0_i32_0 = arith.constant 0 : i32
    return %arg0, %arg1, %c0_i32 : i32, i32, i32
  }
  func.func @transform_1(%arg0: i32, %arg1: i32, %arg2: i32) -> (i32, i32) {
    %c0_i32 = arith.constant 0 : i32
    %c0_i32_0 = arith.constant 0 : i32
    return %c0_i32, %arg2 : i32, i32
  }
  func.func @transform_2(%arg0: i32, %arg1: i32, %arg2: i32) -> (i32, i32) {
    %c0_i32 = arith.constant 0 : i32
    return %arg1, %arg2 : i32, i32
  }
  func.func @transform_3(%arg0: i32, %arg1: i32, %arg2: i32) -> (i32, i32, i32) {
    %c0_i32 = arith.constant 0 : i32
    return %arg0, %arg1, %arg2 : i32, i32, i32
  }
}

</mosaic_0001>

<bundles_post_ra>
// kernel: embedding_layer.1
= control target key start
LH: loop header
LB: loop body
LE: loop exit
PB: predicated region body
PF: predicated region fallthrough
CT: control target
= control target key end

     0   :  { %s612_s12 = smov 0   ;;  %s614_s13 = smov 0   ;;  %s663_s0 = inlined_call_operand.vmem [shape: bf16[2,16,64], index: 0, kind: input, shape index: {}]   ;;  %s664_s1 = inlined_call_operand.vmem [shape: bf16[64,128], index: 1, kind: input, shape index: {}]   ;;  %s665_s2 = inlined_call_operand.vmem [shape: f32[16,128], index: 2, kind: input, shape index: {}]   ;;  %s666_s3 = inlined_call_operand.vmem [shape: f32[2,16,128], index: 3, kind: output, shape index: {}]  }
   0x1   :  { %s616_s14 = smov 0  }
   0x2 LB: > { %s32_s15 = sadd.s32 1, %s584_s13  ;;  %p503_p0 = scmp.ge.s32.totalorder %s588_s14, 1  ;;  %s588_s14 = sphi %s616_s14, %s13_s14   ;;  %s584_s13 = sphi %s614_s13, %s668_s13   ;;  %s580_s12 = sphi %s612_s12, %s667_s12  }
   0x3   : > { %p34_p1 = scmp.ge.s32.totalorder %s32_s15, 2  ;;  %p192_p2 = scmp.lt.s32.totalorder %s588_s14, 3 }
   0x5   : > { %s670_s15 = smov (%p34_p1, %s32_s15), 0  ;;  %p193_p3 = pnand %p503_p0, %p192_p2 }
   0x6   : > { %p240_p4 = scmp.lt.s32.totalorder (!%p193_p3), %s580_s12, 1 }
   0x7   : > { %196 = sbr.rel (%p193_p3) target bundleno = 229 (0xe5), region = 32 }
   0xc   : > { %v561_v0 = vld [vmem:[%s664_s1 + $0x18] sm:$0xff]   ;;  %v590_v1 = vmov 0.0   ;;  %v562_v2 = vld [vmem:[%s664_s1 + $0x10] sm:$0xff]   ;;  %vm591_vm0 = vmmov 0   ;;  %s672_s12 = smov (!%p240_p4, %s580_s12), 1  ;;  %v563_v3 = vld [vmem:[%s664_s1 + $0x8] sm:$0xff]  }
   0xd   : > { %523 = vmatprep.subr.bf16.mxu0 %v590_v1  ;;  %531 = vmatprep.mubr.msk.bf16.mxu0 %vm591_vm0, %v590_v1  ;;  %s516_s22 = sshll.u32 %s672_s12, 3  ;;  %v564_v4 = vld [vmem:[%s664_s1] sm:$0xff]   ;;  %vm317_vm1 = vcmask 523264   ;;  %s517_s28 = sshll.u32 %s672_s12, 4  ;;  %v287_v10 = vld [vmem:[%s665_s2 + $0x8] sm:$0xff] }
   0xe   : > { %524 = vmatpush3.bf16.msra.mxu0 %v561_v0  ;;  %s247_s25 = scalar_lea.vmem %s663_s0, %s516_s22  ;;  %v286_v6 = vld [vmem:[%s665_s2] sm:$0xff]  ;;  %s273_s6 = scalar_lea.vmem %s666_s3, %s517_s28 }
   0xf   : > { %525 = vmatprep.subr.bf16.mxu0 %v590_v1  ;;  %v565_v5 = vld [vmem:[%s247_s25] sm:$0xff]  }
  0x12   : > { %526 = vmatpush3.bf16.msra.mxu0 %v562_v2 }
  0x13   : > { %527 = vmatprep.subr.bf16.mxu0 %v590_v1 }
  0x16   : > { %528 = vmatpush3.bf16.msra.mxu0 %v563_v3 }
  0x17   : > { %529 = vmatprep.subr.bf16.mxu0 %v590_v1 }
  0x1a   : > { %530 = vmatpush3.bf16.msra.mxu0 %v564_v4 }
  0x1d   : > { %532 = vmatmul.mubr.msk.bf16.vlgmr.msra.gmra.mxu0 %vm317_vm1, %v565_v5 }
  0xdd   : > { %v355_v7 = vpop.f32.mrf.mxu0 }
  0xde   : > { %v356_v8 = vadd.f32 %v355_v7, %v286_v6 }
  0xdf   : > { %v533_v9 = vpop.f32.mrf.mxu0 }
  0xe0   : > { %362 = vst [vmem:[%s273_s6] sm:$0xff] %v356_v8 }
  0xe1   : > { %v358_v11 = vpop.f32.mrf.mxu0 }
  0xe2   : > { %v359_v12 = vadd.f32 %v358_v11, %v287_v10 }
  0xe3   : > { %v534_v13 = vpop.f32.mrf.mxu0 }
  0xe4   : > { %363 = vst [vmem:[%s273_s6 + $0x8] sm:$0xff] %v359_v12 }
  0xe5 PF: > { %s13_s14 = sadd.s32 1, %s588_s14   ;;  %s667_s12 = smov %s584_s13 }
  0xe6   : > { %p10_p5 = scmp.ge.s32.totalorder %s13_s14, 4   ;;  %s668_s13 = smov %s670_s15 }
  0xe8   :  { %12 = sbr.rel (!%p10_p5) target bundleno = 2 (0x2), region = 68 }

</bundles_post_ra>
